<compile_context>
chip_gen: v7x
topology: tpu7x:2x2x1
jax: 0.10.0
libtpu: 0.0.40
codegen_flags: <defaults>
</compile_context>

<pallas_src>
import jax
import jax.numpy as jnp
from jax.experimental import pallas as pl
from jax.experimental.pallas import tpu as pltpu

_LANES = 128
# ~4 MiB tiles: big enough to amortize per-step cost (>90% of HBM roofline),
# small enough that 2x double-buffered in+out tiles fit v7x's 32 MiB scoped
# VMEM with lots of headroom (v5e/v6e have 128 MiB physical, trivially fine).
_TARGET_BLOCK_BYTES = 4 * 1024 * 1024
_VMEM_LIMIT_BYTES = 32 * 1024 * 1024


# ----------------------------------------------------------------------------
# Kernel: straight VMEM copy of one (block_rows, 128) lane-dense tile.
# ----------------------------------------------------------------------------
def _identity_kernel(x_ref, o_ref):
    o_ref[...] = x_ref[...]


def _pallas_identity_copy(x2):
    """Lane-dense (rows, 128) identity copy through a Pallas kernel."""
    rows, lanes = x2.shape
    itemsize = jnp.dtype(x2.dtype).itemsize

    # Rows per block, sized to ~_TARGET_BLOCK_BYTES, multiple of 8 sublanes.
    target_rows = max(8, (_TARGET_BLOCK_BYTES // (lanes * itemsize)) // 8 * 8)
    if rows <= target_rows:
        # Single block spanning the full array dim (allowed even if rows % 8 != 0).
        block_rows = rows
    else:
        # Multiple grid steps: keeps the pipeline's prologue/epilogue overlap
        # and lets v7x's two TensorCores both get work via "parallel".
        block_rows = target_rows

    grid = (pl.cdiv(rows, block_rows),)  # ragged last block clipped by Pallas

    return pl.pallas_call(
        _identity_kernel,
        out_shape=jax.ShapeDtypeStruct((rows, lanes), x2.dtype),
        grid=grid,
        in_specs=[pl.BlockSpec((block_rows, lanes), lambda i: (i, 0))],
        out_specs=pl.BlockSpec((block_rows, lanes), lambda i: (i, 0)),
        input_output_aliases={0: 0},
        cost_estimate=pl.CostEstimate(
            flops=0,
            transcendentals=0,
            bytes_accessed=2 * rows * lanes * itemsize,
        ),
        compiler_params=pltpu.CompilerParams(
            dimension_semantics=("parallel",),
            vmem_limit_bytes=_VMEM_LIMIT_BYTES,
        ),
    )(x2)


# ----------------------------------------------------------------------------
# Wrapper.
# ----------------------------------------------------------------------------
def blank_insert_forward(x, *, use_kernel=False):
    """Forward of `blank_insert` (identity).

    Default: short-circuit and return `x` directly (zero HBM traffic) -- the
    mathematically exact and fastest implementation of a no-op module.
    With `use_kernel=True`, route through a lane-dense Pallas copy kernel
    (validation / debug path).
    """
    if not use_kernel:
        return x

    orig_shape = x.shape
    n = int(x.size)
    if n == 0:
        return x
    if jnp.dtype(x.dtype).itemsize < 1:
        # Sub-byte dtypes (int4/fp4): flatten-to-(rows,128) packing is unsafe;
        # identity semantics are preserved by returning the input.
        return x

    flat = x.reshape(-1)

    if n % _LANES == 0:
        # Fast path (common for conv feature maps): no pad, no final slice.
        rows = n // _LANES
        out = _pallas_identity_copy(flat.reshape(rows, _LANES))
        return out.reshape(orig_shape)

    # Ragged path: pad only to the next multiple of 128 (minimal extra traffic).
    rows = -(-n // _LANES)
    padded = rows * _LANES
    flat = jnp.pad(flat, (0, padded - n))
    out = _pallas_identity_copy(flat.reshape(rows, _LANES))
    return out.reshape(-1)[:n].reshape(orig_shape)


if __name__ == "__main__":
    # Small deterministic input consistent with the FDCN pipeline shapes.
    B, C, H, W = 2, 4, 16, 16
    key = jax.random.PRNGKey(0)
    x = jax.random.normal(key, (B, C, H, W), jnp.float32)

    # Production path: pure short-circuit (no kernel launched).
    out_fast = blank_insert_forward(x)
    # Debug/validation path: exercise the Pallas copy kernel once.
    out_kernel = blank_insert_forward(x, use_kernel=True)
    out_fast, out_kernel = jax.block_until_ready((out_fast, out_kernel))

    assert out_fast.shape == x.shape and out_kernel.shape == x.shape
    assert out_fast.dtype == x.dtype and out_kernel.dtype == x.dtype
    if not bool(jnp.array_equal(out_fast, x)):
        raise AssertionError("short-circuit identity output does not match input")
    if not bool(jnp.array_equal(out_kernel, x)):
        raise AssertionError("Pallas identity kernel output does not match input")
    print("KERNEL_OK")
</pallas_src>

<mosaic_0001>
module attributes {stable_mosaic.version = 11 : i64} {
  func.func @_identity_kernel(%arg0: i32, %arg1: memref<16x128xf32, #tpu.memory_space<vmem>>, %arg2: memref<16x128xf32, #tpu.memory_space<vmem>>) attributes {dimension_semantics = [#tpu.dimension_semantics<parallel>], iteration_bounds = array<i64: 1>, scalar_prefetch = 0 : i64, scratch_operands = 0 : i64, tpu.core_type = #tpu.core_type<tc>, window_params = [{transform_indices = @transform_0, window_bounds = array<i64: 16, 128>}, {transform_indices = @transform_1, window_bounds = array<i64: 16, 128>}]} {
    %c0 = arith.constant 0 : index
    %c0_0 = arith.constant 0 : index
    %0 = vector.load %arg1[%c0, %c0_0] : memref<16x128xf32, #tpu.memory_space<vmem>>, vector<16x128xf32>
    %c0_1 = arith.constant 0 : index
    %c0_2 = arith.constant 0 : index
    %1 = vector.load %arg2[%c0_1, %c0_2] : memref<16x128xf32, #tpu.memory_space<vmem>>, vector<16x128xf32>
    tpu.vector_store %arg2[%c0_1, %c0_2], %0 {strides = array<i32>} : memref<16x128xf32, #tpu.memory_space<vmem>>, vector<16x128xf32>,
    return
  }
  func.func @transform_0(%arg0: i32) -> (i32, i32) {
    %c0_i32 = arith.constant 0 : i32
    %c0_i32_0 = arith.constant 0 : i32
    return %arg0, %c0_i32 : i32, i32
  }
  func.func @transform_1(%arg0: i32) -> (i32, i32) {
    %c0_i32 = arith.constant 0 : i32
    %c0_i32_0 = arith.constant 0 : i32
    return %arg0, %c0_i32 : i32, i32
  }
}

</mosaic_0001>

<bundles_post_ra>
// kernel: tpu_custom_call.1
= control target key start
LH: loop header
LB: loop body
LE: loop exit
PB: predicated region body
PF: predicated region fallthrough
CT: control target
= control target key end

     0   :  { %6 = vsyncpa [#allocation3], 0  ;;  %s134_s0 = inlined_call_operand.hbm [shape: f32[16,128], index: 0, kind: input, shape index: {}, may-alias: {0,1}]   ;;  %s135_s1 = inlined_call_operand.hbm [shape: f32[16,128], index: 1, kind: output, shape index: {}, may-alias: {0,1}]  }
   0x1   :  { %7 = vsyncpa [#allocation4], 0  ;;  %s96_s6 = smov [#allocation2]   ;;  %s48_s10 = scalar_lea.hbm %s134_s0, 256 }
   0x2   :  { %s13_s7 = sshll.u32 %s96_s6, 4  ;;  %p49_p0 = scmp.ne.s32.totalorder %s134_s0, %s48_s10  ;;  %s14_s7 = int_to_ptr.vmem [resolvable:$true] %s13_s7 }
   0x3   :  { %p52_p1 = scmp.lt.u32.totalorder %s48_s10, %s134_s0 }
   0x5   :  { %p54_p2 = pnand %p52_p1, %p49_p0 }
   0x7   :  { %57 = shalt.err (!%p54_p2)
}
   0x8   :  { %s58_s15 = scalar_lea.vmem %s14_s7, 256  ;;  %p63_p4 = scmp.lt.s32.totalorder %s14_s7, %s14_s7 }
   0x9   :  { %p59_p3 = scmp.ne.s32.totalorder %s14_s7, %s58_s15  ;;  %p64_p5 = scmp.lt.s32.totalorder %s58_s15, %s58_s15 }
   0xb   :  { %p65_p6 = por %p64_p5, %p63_p4 }
   0xd   :  { %p66_p7 = pnand %p65_p6, %p59_p3 }
   0xf   :  { %69 = shalt.err (!%p66_p7)
}
  0x10   :  { %s97_s16 = smov 128   ;;  %s98_s17 = smov 8  }
  0x11   :  { %19 = dma.hbm_to_vmem [thread:$0]  %s134_s0, 256, %s14_s7, [#allocation3], %s97_s16, %s97_s16, %s98_s17  }
  0x12   :  { %92 = dma.done.wait [#allocation3], 256  }
  0x13   :  { %93 = vsyncadd [#allocation3], 4294967040  ;;  %s99_s20 = smov [#allocation5]   ;;  %v23_v0 = vld [vmem:[#allocation2] sm:$0xff]  ;;  %v24_v1 = vld [vmem:[#allocation2 + $0x8] sm:$0xff] }
  0x14   :  { %s32_s21 = sshll.u32 %s99_s20, 4  ;;  %25 = vst [vmem:[#allocation5] sm:$0xff] %v23_v0  ;;  %26 = vst [vmem:[#allocation5 + $0x8] sm:$0xff] %v24_v1  ;;  %s33_s21 = int_to_ptr.vmem [resolvable:$true] %s32_s21 }
  0x15   :  { %s70_s22 = scalar_lea.vmem %s33_s21, 256  ;;  %p75_p9 = scmp.lt.s32.totalorder %s33_s21, %s33_s21 }
  0x16   :  { %p71_p8 = scmp.ne.s32.totalorder %s33_s21, %s70_s22  ;;  %p76_p10 = scmp.lt.s32.totalorder %s70_s22, %s70_s22 }
  0x18   :  { %p77_p11 = por %p76_p10, %p75_p9 }
  0x1a   :  { %p78_p12 = pnand %p77_p11, %p71_p8 }
  0x1c   :  { %81 = shalt.err (!%p78_p12)
}
  0x1d   :  { %s82_s0 = scalar_lea.hbm %s135_s1, 256 }
  0x1e   :  { %p83_p13 = scmp.ne.s32.totalorder %s135_s1, %s82_s0  ;;  %p86_p0 = scmp.lt.u32.totalorder %s82_s0, %s135_s1 }
  0x20   :  { %p88_p1 = pnand %p86_p0, %p83_p13 }
  0x22   :  { %91 = shalt.err (!%p88_p1)
}
  0x23   :  { %38 = dma.vmem_to_hbm [thread:$0]  %s33_s21, 256, %s135_s1, [#allocation4], %s97_s16, %s97_s16, %s98_s17  }
  0x24   :  { %94 = dma.done.wait [#allocation4], 256  }
  0x25   :  { %95 = vsyncadd [#allocation4], 4294967040 }
  0x26   :  { %42 = vsyncpa [#allocation3], 1 }
  0x27   :  { %43 = vsyncpa [#allocation4], 1 }

</bundles_post_ra>
